<compile_context>
chip_gen: v7x
topology: tpu7x:2x2x1
jax: 0.10.0
libtpu: 0.0.40
codegen_flags: <defaults>
</compile_context>

<pallas_src>
import functools
import math

import jax
import jax.numpy as jnp
from jax.experimental import pallas as pl
from jax.experimental.pallas import tpu as pltpu

LN_EPS = 1e-5
MM_DTYPE = jnp.bfloat16          # matmul-operand dtype; elementwise math in f32
ROW_TARGET = 2048                # target TB*N rows per grid step
VMEM_LIMIT_BYTES = 32 * 1024 * 1024


def _normalize(x):
    """LayerNorm without the affine (affine is folded into adjacent weights)."""
    mu = jnp.mean(x, axis=-1, keepdims=True)
    xc = x - mu
    var = jnp.mean(xc * xc, axis=-1, keepdims=True)
    return xc * jax.lax.rsqrt(var + LN_EPS)


def abstractor_kernel(
    x_ref,                  # (1, TB, N, P) f32 patches
    wemb_ref, bemb_ref,     # (P, D) bf16, (1, D) f32  -- LN1 affine folded in
    wq_ref, bq_ref,         # (D, D) bf16, (1, D) f32  -- LN2 affine + 1/sqrt(D)
    wk_ref, bk_ref,         # (D, D) bf16, (1, D) f32  -- LN2 affine folded in
    vm1_ref, bm1_ref,       # (N, D) bf16, (1, D) f32  -- sym@Wv@Wo@Wm1
    wm2_ref, bm2_ref,       # (D, NCp) bf16, (1, NCp) f32 (lane-padded)
    out_ref,                # (1, TB, NCp) f32
):
    TB, N, P = x_ref.shape[1], x_ref.shape[2], x_ref.shape[3]
    D = wq_ref.shape[0]

    # --- patch embedder: LN (normalize) -> Linear -> LN (normalize) ---
    x = x_ref[0].reshape(TB * N, P)                      # fold batch into M dim
    xn = _normalize(x)
    z = jnp.dot(xn.astype(MM_DTYPE), wemb_ref[...],
                preferred_element_type=jnp.float32) + bemb_ref[...]
    zn = _normalize(z).astype(MM_DTYPE)                  # (TB*N, D)

    # --- relational cross-attention (scale already folded into Wq) ---
    q = (jnp.dot(zn, wq_ref[...], preferred_element_type=jnp.float32)
         + bq_ref[...]).astype(MM_DTYPE).reshape(TB, N, D)
    k = (jnp.dot(zn, wk_ref[...], preferred_element_type=jnp.float32)
         + bk_ref[...]).astype(MM_DTYPE).reshape(TB, N, D)

    # batched q @ k^T: contract both on the last dim (no explicit transpose).
    scores = jax.lax.dot_general(
        q, k, dimension_numbers=(((2,), (2,)), ((0,), (0,))),
        preferred_element_type=jnp.float32)              # (TB, N, N)
    scores = scores - jnp.max(scores, axis=-1, keepdims=True)
    e = jnp.exp(scores)
    attn = e * pl.reciprocal(jnp.sum(e, axis=-1, keepdims=True), approx=True)

    # mean over tokens commutes with the linear value/output/Wm1 chain:
    #   mean_n(attn @ sym Wv Wo) Wm1 = (mean_n attn) @ (sym Wv Wo Wm1)
    pooled_attn = jnp.mean(attn, axis=1)                 # (TB, N)

    # --- MLP head: Linear -> ReLU -> Linear ---
    h = jnp.dot(pooled_attn.astype(MM_DTYPE), vm1_ref[...],
                preferred_element_type=jnp.float32) + bm1_ref[...]
    h = jnp.maximum(h, 0.0)
    logits = jnp.dot(h.astype(MM_DTYPE), wm2_ref[...],
                     preferred_element_type=jnp.float32) + bm2_ref[...]
    out_ref[0] = logits                                  # (TB, NCp) lane-dense


def _choose_tb(batch, n_patches):
    """Samples per grid step: target ~ROW_TARGET matmul rows, never force a
    split (the grid is a serial loop on single-TC v5e/v6e; at large batch the
    grid has several steps anyway so v7x's two TensorCores both get work)."""
    tb = max(1, ROW_TARGET // max(n_patches, 1))
    if tb >= 8:
        tb = (tb // 8) * 8        # full-sublane output blocks when possible
    return min(tb, batch)


def prepare_params(params):
    """One-time, batch-independent weight folding (call once, outside jit)."""
    (ln1g, ln1b, wemb, bemb, ln2g, ln2b,
     wq, wk, wv, wo, sym, wm1, bm1, wm2, bm2) = params
    D = wemb.shape[1]
    scale = 1.0 / math.sqrt(D)

    # LN1 affine folded into the patch-embedding Linear.
    wemb_f = (ln1g.reshape(-1, 1) * wemb).astype(MM_DTYPE)            # (P, D)
    bemb_f = ln1b @ wemb + bemb                                       # (1, D)
    # LN2 affine folded into Wq/Wk; 1/sqrt(D) folded into the Wq path.
    wq_f = (ln2g.reshape(-1, 1) * wq * scale).astype(MM_DTYPE)        # (D, D)
    bq_f = (ln2b @ wq) * scale                                        # (1, D)
    wk_f = (ln2g.reshape(-1, 1) * wk).astype(MM_DTYPE)                # (D, D)
    bk_f = ln2b @ wk                                                  # (1, D)
    # Batch-independent value path collapsed through the linear mean-pool.
    vm1 = (sym @ wv @ wo @ wm1).astype(MM_DTYPE)                      # (N, D)
    # Final classifier, lane-padded to 128 for unmasked vector stores.
    NC = wm2.shape[1]
    NCp = 128 * pl.cdiv(NC, 128)
    wm2_p = jnp.zeros((D, NCp), MM_DTYPE).at[:, :NC].set(wm2.astype(MM_DTYPE))
    bm2_p = jnp.zeros((1, NCp), jnp.float32).at[:, :NC].set(bm2)

    return (wemb_f, bemb_f, wq_f, bq_f, wk_f, bk_f, vm1,
            bm1, wm2_p, bm2_p)


def abstractor_model_forward(x_nchw, prepared, *, patch_h, patch_w, num_classes):
    """x_nchw: (B, C, H, W) float32 image batch (PyTorch layout)."""
    B, C, H, W = x_nchw.shape
    nh, nw = H // patch_h, W // patch_w
    N = nh * nw
    P = patch_h * patch_w * C

    (wemb_f, bemb_f, wq_f, bq_f, wk_f, bk_f, vm1, bm1, wm2_p, bm2_p) = prepared
    NCp = wm2_p.shape[1]

    # Rearrange 'b c (h p1) (w p2) -> b (h w) (p1 p2 c)' (data movement only;
    # allow_input_fusion lets XLA fuse it into the pallas_call input).
    patches = x_nchw.reshape(B, C, nh, patch_h, nw, patch_w)
    patches = jnp.transpose(patches, (0, 2, 4, 3, 5, 1))     # b h w p1 p2 c
    patches = patches.reshape(B, N, P).astype(jnp.float32)

    TB = _choose_tb(B, N)
    num_steps = pl.cdiv(B, TB)
    B_pad = num_steps * TB
    if B_pad != B:
        patches = jnp.concatenate(
            [patches, jnp.zeros((B_pad - B, N, P), jnp.float32)], axis=0)
    patches = patches.reshape(num_steps, TB, N, P)

    weights = (wemb_f, bemb_f, wq_f, bq_f, wk_f, bk_f, vm1, bm1, wm2_p, bm2_p)
    full = lambda arr: pl.BlockSpec(arr.shape, lambda b, n=arr.ndim: (0,) * n)

    out = pl.pallas_call(
        abstractor_kernel,
        out_shape=jax.ShapeDtypeStruct((num_steps, TB, NCp), jnp.float32),
        grid=(num_steps,),
        in_specs=[pl.BlockSpec((1, TB, N, P), lambda b: (b, 0, 0, 0))]
                 + [full(w) for w in weights],
        out_specs=pl.BlockSpec((1, TB, NCp), lambda b: (b, 0, 0)),
        compiler_params=pltpu.CompilerParams(
            dimension_semantics=("parallel",),
            vmem_limit_bytes=VMEM_LIMIT_BYTES,
            allow_input_fusion=[True] + [False] * len(weights),
        ),
    )(patches, *weights)

    return out.reshape(B_pad, NCp)[:B, :num_classes]


# ----------------------------------------------------------------------------
# Unfolded pure-JAX reference (mirrors the PyTorch module) + param init.
# ----------------------------------------------------------------------------
def reference_forward(x_nchw, params, *, patch_h, patch_w):
    B, C, H, W = x_nchw.shape
    nh, nw = H // patch_h, W // patch_w
    N, P = nh * nw, patch_h * patch_w * C
    (ln1g, ln1b, wemb, bemb, ln2g, ln2b,
     wq, wk, wv, wo, sym, wm1, bm1, wm2, bm2) = params
    D = wemb.shape[1]

    p = x_nchw.reshape(B, C, nh, patch_h, nw, patch_w)
    p = jnp.transpose(p, (0, 2, 4, 3, 5, 1)).reshape(B, N, P)

    def ln(v, g, b):
        mu = jnp.mean(v, -1, keepdims=True)
        var = jnp.mean((v - mu) ** 2, -1, keepdims=True)
        return (v - mu) * jax.lax.rsqrt(var + LN_EPS) * g + b

    z = ln(ln(p, ln1g, ln1b) @ wemb + bemb, ln2g, ln2b)       # (B, N, D)
    q = z @ wq
    k = z @ wk
    v = sym @ wv                                              # (N, D)
    s = jnp.einsum('bnd,bmd->bnm', q, k) / math.sqrt(D)
    a = jax.nn.softmax(s, axis=-1)
    o = jnp.einsum('bnm,md->bnd', a, v) @ wo
    pooled = jnp.mean(o, axis=1)
    h = jnp.maximum(pooled @ wm1 + bm1, 0.0)
    return h @ wm2 + bm2


def init_params(key, *, patch_dim, d_model, num_patches, num_classes):
    ks = jax.random.split(key, 9)
    s = lambda k, shape, fan_in: (jax.random.normal(k, shape, jnp.float32)
                                  / jnp.sqrt(jnp.float32(fan_in)))
    ln1g = jnp.ones((1, patch_dim), jnp.float32)
    ln1b = jnp.zeros((1, patch_dim), jnp.float32)
    wemb = s(ks[0], (patch_dim, d_model), patch_dim)
    bemb = jnp.zeros((1, d_model), jnp.float32)
    ln2g = jnp.ones((1, d_model), jnp.float32)
    ln2b = jnp.zeros((1, d_model), jnp.float32)
    wq = s(ks[1], (d_model, d_model), d_model)
    wk = s(ks[2], (d_model, d_model), d_model)
    wv = s(ks[3], (d_model, d_model), d_model)
    wo = s(ks[4], (d_model, d_model), d_model)
    sym = s(ks[5], (num_patches, d_model), 1.0)
    wm1 = s(ks[6], (d_model, d_model), d_model)
    bm1 = jnp.zeros((1, d_model), jnp.float32)
    wm2 = s(ks[7], (d_model, num_classes), d_model)
    bm2 = jnp.zeros((1, num_classes), jnp.float32)
    return (ln1g, ln1b, wemb, bemb, ln2g, ln2b,
            wq, wk, wv, wo, sym, wm1, bm1, wm2, bm2)


if __name__ == "__main__":
    # Small shapes consistent with the module:
    # image_shape=(3, 16, 16), patch_size=(4, 4), d_model=32, num_classes=4.
    B, C, H, W = 2, 3, 16, 16
    patch_h, patch_w = 4, 4
    d_model, num_classes = 32, 4
    num_patches = (H // patch_h) * (W // patch_w)   # 16
    patch_dim = patch_h * patch_w * C               # 48

    key = jax.random.PRNGKey(0)
    kx, kp = jax.random.split(key)
    x = jax.random.normal(kx, (B, C, H, W), jnp.float32)
    params = init_params(kp, patch_dim=patch_dim, d_model=d_model,
                         num_patches=num_patches, num_classes=num_classes)

    prepared = prepare_params(params)               # one-time weight folding
    forward = jax.jit(functools.partial(
        abstractor_model_forward,
        patch_h=patch_h, patch_w=patch_w, num_classes=num_classes))

    logits = forward(x, prepared)
    jax.block_until_ready(logits)

    ref = reference_forward(x, params, patch_h=patch_h, patch_w=patch_w)
    assert logits.shape == (B, num_classes)
    assert bool(jnp.all(jnp.isfinite(logits)))
    # bf16 operands + approx reciprocal -> tolerance check, not bit-exact.
    assert bool(jnp.allclose(logits, ref, atol=1e-1, rtol=1e-1))
    print("KERNEL_OK")
</pallas_src>

<mosaic_0001>
module attributes {stable_mosaic.version = 11 : i64} {
  func.func @abstractor_kernel(%arg0: i32, %arg1: memref<1x2x16x48xf32, #tpu.memory_space<vmem>>, %arg2: memref<48x32xbf16, #tpu.memory_space<vmem>>, %arg3: memref<1x32xf32, #tpu.memory_space<vmem>>, %arg4: memref<32x32xbf16, #tpu.memory_space<vmem>>, %arg5: memref<1x32xf32, #tpu.memory_space<vmem>>, %arg6: memref<32x32xbf16, #tpu.memory_space<vmem>>, %arg7: memref<1x32xf32, #tpu.memory_space<vmem>>, %arg8: memref<16x32xbf16, #tpu.memory_space<vmem>>, %arg9: memref<1x32xf32, #tpu.memory_space<vmem>>, %arg10: memref<32x128xbf16, #tpu.memory_space<vmem>>, %arg11: memref<1x128xf32, #tpu.memory_space<vmem>>, %arg12: memref<1x2x128xf32, #tpu.memory_space<vmem>>) attributes {dimension_semantics = [#tpu.dimension_semantics<parallel>], iteration_bounds = array<i64: 1>, scalar_prefetch = 0 : i64, scratch_operands = 0 : i64, tpu.core_type = #tpu.core_type<tc>, window_params = [{transform_indices = @transform_0, window_bounds = array<i64: 1, 2, 16, 48>}, {pipeline_mode = #tpu.pipeline_mode<synchronous>, transform_indices = @transform_1, window_bounds = array<i64: 48, 32>}, {pipeline_mode = #tpu.pipeline_mode<synchronous>, transform_indices = @transform_2, window_bounds = array<i64: 1, 32>}, {pipeline_mode = #tpu.pipeline_mode<synchronous>, transform_indices = @transform_3, window_bounds = array<i64: 32, 32>}, {pipeline_mode = #tpu.pipeline_mode<synchronous>, transform_indices = @transform_4, window_bounds = array<i64: 1, 32>}, {pipeline_mode = #tpu.pipeline_mode<synchronous>, transform_indices = @transform_5, window_bounds = array<i64: 32, 32>}, {pipeline_mode = #tpu.pipeline_mode<synchronous>, transform_indices = @transform_6, window_bounds = array<i64: 1, 32>}, {pipeline_mode = #tpu.pipeline_mode<synchronous>, transform_indices = @transform_7, window_bounds = array<i64: 16, 32>}, {pipeline_mode = #tpu.pipeline_mode<synchronous>, transform_indices = @transform_8, window_bounds = array<i64: 1, 32>}, {pipeline_mode = #tpu.pipeline_mode<synchronous>, transform_indices = @transform_9, window_bounds = array<i64: 32, 128>}, {pipeline_mode = #tpu.pipeline_mode<synchronous>, transform_indices = @transform_10, window_bounds = array<i64: 1, 128>}, {transform_indices = @transform_11, window_bounds = array<i64: 1, 2, 128>}]} {
    %c0 = arith.constant 0 : index
    %c0_0 = arith.constant 0 : index
    %c0_1 = arith.constant 0 : index
    %c0_2 = arith.constant 0 : index
    %0 = vector.load %arg1[%c0, %c0_0, %c0_1, %c0_2] : memref<1x2x16x48xf32, #tpu.memory_space<vmem>>, vector<1x2x16x48xf32>
    %1 = vector.shape_cast %0 : vector<1x2x16x48xf32> to vector<2x16x48xf32>
    %2 = vector.shape_cast %1 : vector<2x16x48xf32> to vector<32x48xf32>
    %cst = arith.constant dense<0.000000e+00> : vector<32xf32>
    %3 = vector.multi_reduction <add>, %2, %cst [1] : vector<32x48xf32> to vector<32xf32>
    %4 = vector.shape_cast %3 : vector<32xf32> to vector<32x1xf32>
    %cst_3 = arith.constant 4.800000e+01 : f32
    %5 = vector.broadcast %cst_3 : f32 to vector<32x1xf32>
    %6 = arith.divf %4, %5 : vector<32x1xf32>
    %7 = vector.broadcast %6 : vector<32x1xf32> to vector<32x48xf32>
    %8 = arith.subf %2, %7 : vector<32x48xf32>
    %9 = arith.mulf %8, %8 : vector<32x48xf32>
    %cst_4 = arith.constant dense<0.000000e+00> : vector<32xf32>
    %10 = vector.multi_reduction <add>, %9, %cst_4 [1] : vector<32x48xf32> to vector<32xf32>
    %11 = vector.shape_cast %10 : vector<32xf32> to vector<32x1xf32>
    %cst_5 = arith.constant 4.800000e+01 : f32
    %12 = vector.broadcast %cst_5 : f32 to vector<32x1xf32>
    %13 = arith.divf %11, %12 : vector<32x1xf32>
    %cst_6 = arith.constant 9.99999974E-6 : f32
    %14 = vector.broadcast %cst_6 : f32 to vector<32x1xf32>
    %15 = arith.addf %13, %14 : vector<32x1xf32>
    %16 = math.rsqrt %15 : vector<32x1xf32>
    %17 = vector.broadcast %16 : vector<32x1xf32> to vector<32x48xf32>
    %18 = arith.mulf %8, %17 : vector<32x48xf32>
    %19 = arith.truncf %18 : vector<32x48xf32> to vector<32x48xbf16>
    %c0_7 = arith.constant 0 : index
    %c0_8 = arith.constant 0 : index
    %20 = vector.load %arg2[%c0_7, %c0_8] : memref<48x32xbf16, #tpu.memory_space<vmem>>, vector<48x32xbf16>
    %cst_9 = arith.constant dense<0.000000e+00> : vector<32x32xf32>
    %21 = tpu.matmul %19, %20, %cst_9 {dimension_numbers = #tpu.dot_dimension_numbers<[1], [0], [0], [1], [0, 0, 1, 1], [], []>} : vector<32x48xbf16>, vector<48x32xbf16>, vector<32x32xf32> -> vector<32x32xf32>
    %c0_10 = arith.constant 0 : index
    %c0_11 = arith.constant 0 : index
    %22 = vector.load %arg3[%c0_10, %c0_11] : memref<1x32xf32, #tpu.memory_space<vmem>>, vector<1x32xf32>
    %23 = vector.broadcast %22 : vector<1x32xf32> to vector<32x32xf32>
    %24 = arith.addf %21, %23 : vector<32x32xf32>
    %cst_12 = arith.constant dense<0.000000e+00> : vector<32xf32>
    %25 = vector.multi_reduction <add>, %24, %cst_12 [1] : vector<32x32xf32> to vector<32xf32>
    %26 = vector.shape_cast %25 : vector<32xf32> to vector<32x1xf32>
    %cst_13 = arith.constant 3.200000e+01 : f32
    %27 = vector.broadcast %cst_13 : f32 to vector<32x1xf32>
    %28 = arith.divf %26, %27 : vector<32x1xf32>
    %29 = vector.broadcast %28 : vector<32x1xf32> to vector<32x32xf32>
    %30 = arith.subf %24, %29 : vector<32x32xf32>
    %31 = arith.mulf %30, %30 : vector<32x32xf32>
    %cst_14 = arith.constant dense<0.000000e+00> : vector<32xf32>
    %32 = vector.multi_reduction <add>, %31, %cst_14 [1] : vector<32x32xf32> to vector<32xf32>
    %33 = vector.shape_cast %32 : vector<32xf32> to vector<32x1xf32>
    %cst_15 = arith.constant 3.200000e+01 : f32
    %34 = vector.broadcast %cst_15 : f32 to vector<32x1xf32>
    %35 = arith.divf %33, %34 : vector<32x1xf32>
    %cst_16 = arith.constant 9.99999974E-6 : f32
    %36 = vector.broadcast %cst_16 : f32 to vector<32x1xf32>
    %37 = arith.addf %35, %36 : vector<32x1xf32>
    %38 = math.rsqrt %37 : vector<32x1xf32>
    %39 = vector.broadcast %38 : vector<32x1xf32> to vector<32x32xf32>
    %40 = arith.mulf %30, %39 : vector<32x32xf32>
    %41 = arith.truncf %40 : vector<32x32xf32> to vector<32x32xbf16>
    %c0_17 = arith.constant 0 : index
    %c0_18 = arith.constant 0 : index
    %42 = vector.load %arg4[%c0_17, %c0_18] : memref<32x32xbf16, #tpu.memory_space<vmem>>, vector<32x32xbf16>
    %cst_19 = arith.constant dense<0.000000e+00> : vector<32x32xf32>
    %43 = tpu.matmul %41, %42, %cst_19 {dimension_numbers = #tpu.dot_dimension_numbers<[1], [0], [0], [1], [0, 0, 1, 1], [], []>} : vector<32x32xbf16>, vector<32x32xbf16>, vector<32x32xf32> -> vector<32x32xf32>
    %c0_20 = arith.constant 0 : index
    %c0_21 = arith.constant 0 : index
    %44 = vector.load %arg5[%c0_20, %c0_21] : memref<1x32xf32, #tpu.memory_space<vmem>>, vector<1x32xf32>
    %45 = vector.broadcast %44 : vector<1x32xf32> to vector<32x32xf32>
    %46 = arith.addf %43, %45 : vector<32x32xf32>
    %47 = arith.truncf %46 : vector<32x32xf32> to vector<32x32xbf16>
    %48 = vector.shape_cast %47 : vector<32x32xbf16> to vector<2x16x32xbf16>
    %c0_22 = arith.constant 0 : index
    %c0_23 = arith.constant 0 : index
    %49 = vector.load %arg6[%c0_22, %c0_23] : memref<32x32xbf16, #tpu.memory_space<vmem>>, vector<32x32xbf16>
    %cst_24 = arith.constant dense<0.000000e+00> : vector<32x32xf32>
    %50 = tpu.matmul %41, %49, %cst_24 {dimension_numbers = #tpu.dot_dimension_numbers<[1], [0], [0], [1], [0, 0, 1, 1], [], []>} : vector<32x32xbf16>, vector<32x32xbf16>, vector<32x32xf32> -> vector<32x32xf32>
    %c0_25 = arith.constant 0 : index
    %c0_26 = arith.constant 0 : index
    %51 = vector.load %arg7[%c0_25, %c0_26] : memref<1x32xf32, #tpu.memory_space<vmem>>, vector<1x32xf32>
    %52 = vector.broadcast %51 : vector<1x32xf32> to vector<32x32xf32>
    %53 = arith.addf %50, %52 : vector<32x32xf32>
    %54 = arith.truncf %53 : vector<32x32xf32> to vector<32x32xbf16>
    %55 = vector.shape_cast %54 : vector<32x32xbf16> to vector<2x16x32xbf16>
    %cst_27 = arith.constant dense<0.000000e+00> : vector<2x16x16xf32>
    %56 = tpu.matmul %48, %55, %cst_27 {dimension_numbers = #tpu.dot_dimension_numbers<[2], [2], [1], [1], [0, 0, 0, 1, 1, 1], [0], [0]>} : vector<2x16x32xbf16>, vector<2x16x32xbf16>, vector<2x16x16xf32> -> vector<2x16x16xf32>
    %cst_28 = arith.constant dense<0xFF800000> : vector<2x16xf32>
    %57 = vector.multi_reduction <maximumf>, %56, %cst_28 [2] : vector<2x16x16xf32> to vector<2x16xf32>
    %58 = vector.shape_cast %57 : vector<2x16xf32> to vector<2x16x1xf32>
    %59 = vector.broadcast %58 : vector<2x16x1xf32> to vector<2x16x16xf32>
    %60 = arith.subf %56, %59 : vector<2x16x16xf32>
    %61 = math.exp %60 : vector<2x16x16xf32>
    %cst_29 = arith.constant dense<0.000000e+00> : vector<2x16xf32>
    %62 = vector.multi_reduction <add>, %61, %cst_29 [2] : vector<2x16x16xf32> to vector<2x16xf32>
    %63 = vector.shape_cast %62 : vector<2x16xf32> to vector<2x16x1xf32>
    %64 = tpu.reciprocal %63 {approx = true} : vector<2x16x1xf32> -> vector<2x16x1xf32>
    %65 = vector.broadcast %64 : vector<2x16x1xf32> to vector<2x16x16xf32>
    %66 = arith.mulf %61, %65 : vector<2x16x16xf32>
    %cst_30 = arith.constant dense<0.000000e+00> : vector<2x16xf32>
    %67 = vector.multi_reduction <add>, %66, %cst_30 [1] : vector<2x16x16xf32> to vector<2x16xf32>
    %cst_31 = arith.constant 1.600000e+01 : f32
    %68 = vector.broadcast %cst_31 : f32 to vector<2x16xf32>
    %69 = arith.divf %67, %68 : vector<2x16xf32>
    %70 = arith.truncf %69 : vector<2x16xf32> to vector<2x16xbf16>
    %c0_32 = arith.constant 0 : index
    %c0_33 = arith.constant 0 : index
    %71 = vector.load %arg8[%c0_32, %c0_33] : memref<16x32xbf16, #tpu.memory_space<vmem>>, vector<16x32xbf16>
    %cst_34 = arith.constant dense<0.000000e+00> : vector<2x32xf32>
    %72 = tpu.matmul %70, %71, %cst_34 {dimension_numbers = #tpu.dot_dimension_numbers<[1], [0], [0], [1], [0, 0, 1, 1], [], []>} : vector<2x16xbf16>, vector<16x32xbf16>, vector<2x32xf32> -> vector<2x32xf32>
    %c0_35 = arith.constant 0 : index
    %c0_36 = arith.constant 0 : index
    %73 = vector.load %arg9[%c0_35, %c0_36] : memref<1x32xf32, #tpu.memory_space<vmem>>, vector<1x32xf32>
    %74 = vector.broadcast %73 : vector<1x32xf32> to vector<2x32xf32>
    %75 = arith.addf %72, %74 : vector<2x32xf32>
    %cst_37 = arith.constant 0.000000e+00 : f32
    %76 = vector.broadcast %cst_37 : f32 to vector<2x32xf32>
    %77 = arith.maximumf %75, %76 : vector<2x32xf32>
    %78 = arith.truncf %77 : vector<2x32xf32> to vector<2x32xbf16>
    %c0_38 = arith.constant 0 : index
    %c0_39 = arith.constant 0 : index
    %79 = vector.load %arg10[%c0_38, %c0_39] : memref<32x128xbf16, #tpu.memory_space<vmem>>, vector<32x128xbf16>
    %cst_40 = arith.constant dense<0.000000e+00> : vector<2x128xf32>
    %80 = tpu.matmul %78, %79, %cst_40 {dimension_numbers = #tpu.dot_dimension_numbers<[1], [0], [0], [1], [0, 0, 1, 1], [], []>} : vector<2x32xbf16>, vector<32x128xbf16>, vector<2x128xf32> -> vector<2x128xf32>
    %c0_41 = arith.constant 0 : index
    %c0_42 = arith.constant 0 : index
    %81 = vector.load %arg11[%c0_41, %c0_42] : memref<1x128xf32, #tpu.memory_space<vmem>>, vector<1x128xf32>
    %82 = vector.broadcast %81 : vector<1x128xf32> to vector<2x128xf32>
    %83 = arith.addf %80, %82 : vector<2x128xf32>
    %c0_43 = arith.constant 0 : index
    %c0_44 = arith.constant 0 : index
    %c0_45 = arith.constant 0 : index
    %84 = vector.load %arg12[%c0_43, %c0_44, %c0_45] : memref<1x2x128xf32, #tpu.memory_space<vmem>>, vector<1x2x128xf32>
    %85 = vector.shape_cast %84 : vector<1x2x128xf32> to vector<2x128xf32>
    %86 = vector.shape_cast %83 : vector<2x128xf32> to vector<1x2x128xf32>
    tpu.vector_store %arg12[%c0_43, %c0_44, %c0_45], %86 {strides = array<i32>} : memref<1x2x128xf32, #tpu.memory_space<vmem>>, vector<1x2x128xf32>,
    return
  }
  func.func @transform_0(%arg0: i32) -> (i32, i32, i32, i32) {
    %c0_i32 = arith.constant 0 : i32
    %c0_i32_0 = arith.constant 0 : i32
    %c0_i32_1 = arith.constant 0 : i32
    %c0_i32_2 = arith.constant 0 : i32
    return %arg0, %c0_i32, %c0_i32_0, %c0_i32_1 : i32, i32, i32, i32
  }
  func.func @transform_1(%arg0: i32) -> (i32, i32) {
    %c0_i32 = arith.constant 0 : i32
    %c0_i32_0 = arith.constant 0 : i32
    %c0_i32_1 = arith.constant 0 : i32
    return %c0_i32, %c0_i32_0 : i32, i32
  }
  func.func @transform_2(%arg0: i32) -> (i32, i32) {
    %c0_i32 = arith.constant 0 : i32
    %c0_i32_0 = arith.constant 0 : i32
    %c0_i32_1 = arith.constant 0 : i32
    return %c0_i32, %c0_i32_0 : i32, i32
  }
  func.func @transform_3(%arg0: i32) -> (i32, i32) {
    %c0_i32 = arith.constant 0 : i32
    %c0_i32_0 = arith.constant 0 : i32
    %c0_i32_1 = arith.constant 0 : i32
    return %c0_i32, %c0_i32_0 : i32, i32
  }
  func.func @transform_4(%arg0: i32) -> (i32, i32) {
    %c0_i32 = arith.constant 0 : i32
    %c0_i32_0 = arith.constant 0 : i32
    %c0_i32_1 = arith.constant 0 : i32
    return %c0_i32, %c0_i32_0 : i32, i32
  }
  func.func @transform_5(%arg0: i32) -> (i32, i32) {
    %c0_i32 = arith.constant 0 : i32
    %c0_i32_0 = arith.constant 0 : i32
    %c0_i32_1 = arith.constant 0 : i32
    return %c0_i32, %c0_i32_0 : i32, i32
  }
  func.func @transform_6(%arg0: i32) -> (i32, i32) {
    %c0_i32 = arith.constant 0 : i32
    %c0_i32_0 = arith.constant 0 : i32
    %c0_i32_1 = arith.constant 0 : i32
    return %c0_i32, %c0_i32_0 : i32, i32
  }
  func.func @transform_7(%arg0: i32) -> (i32, i32) {
    %c0_i32 = arith.constant 0 : i32
    %c0_i32_0 = arith.constant 0 : i32
    %c0_i32_1 = arith.constant 0 : i32
    return %c0_i32, %c0_i32_0 : i32, i32
  }
  func.func @transform_8(%arg0: i32) -> (i32, i32) {
    %c0_i32 = arith.constant 0 : i32
    %c0_i32_0 = arith.constant 0 : i32
    %c0_i32_1 = arith.constant 0 : i32
    return %c0_i32, %c0_i32_0 : i32, i32
  }
  func.func @transform_9(%arg0: i32) -> (i32, i32) {
    %c0_i32 = arith.constant 0 : i32
    %c0_i32_0 = arith.constant 0 : i32
    %c0_i32_1 = arith.constant 0 : i32
    return %c0_i32, %c0_i32_0 : i32, i32
  }
  func.func @transform_10(%arg0: i32) -> (i32, i32) {
    %c0_i32 = arith.constant 0 : i32
    %c0_i32_0 = arith.constant 0 : i32
    %c0_i32_1 = arith.constant 0 : i32
    return %c0_i32, %c0_i32_0 : i32, i32
  }
  func.func @transform_11(%arg0: i32) -> (i32, i32, i32) {
    %c0_i32 = arith.constant 0 : i32
    %c0_i32_0 = arith.constant 0 : i32
    %c0_i32_1 = arith.constant 0 : i32
    return %arg0, %c0_i32, %c0_i32_0 : i32, i32, i32
  }
}

</mosaic_0001>

<bundles_post_ra>
// kernel: abstractor_model_forward.1
= control target key start
LH: loop header
LB: loop body
LE: loop exit
PB: predicated region body
PF: predicated region fallthrough
CT: control target
= control target key end

     0   :  { %vm44_vm0 = vcmask 392192   ;;  %s1059_s0 = inlined_call_operand.vmem [shape: f32[1,2,16,48], index: 0, kind: input, shape index: {}]   ;;  %s1060_s1 = inlined_call_operand.vmem [shape: bf16[48,32], index: 1, kind: input, shape index: {}]   ;;  %s1061_s2 = inlined_call_operand.vmem [shape: f32[1,32], index: 2, kind: input, shape index: {}]   ;;  %s1062_s3 = inlined_call_operand.vmem [shape: bf16[32,32], index: 3, kind: input, shape index: {}]   ;;  %s1063_s4 = inlined_call_operand.vmem [shape: f32[1,32], index: 4, kind: input, shape index: {}]   ;;  %s1064_s5 = inlined_call_operand.vmem [shape: bf16[32,32], index: 5, kind: input, shape index: {}]   ;;  %s1065_s6 = inlined_call_operand.vmem [shape: f32[1,32], index: 6, kind: input, shape index: {}]   ;;  %s1066_s7 = inlined_call_operand.vmem [shape: bf16[16,32], index: 7, kind: input, shape index: {}]   ;;  %s1067_s8 = inlined_call_operand.vmem [shape: f32[1,32], index: 8, kind: input, shape index: {}]   ;;  %s1068_s9 = inlined_call_operand.vmem [shape: bf16[32,128], index: 9, kind: input, shape index: {}]   ;;  %s1069_s10 = inlined_call_operand.vmem [shape: f32[1,128], index: 10, kind: input, shape index: {}]   ;;  %s1070_s11 = inlined_call_operand.hbm [shape: f32[1,2,128], index: 11, kind: output, shape index: {}]  }
   0x1   :  { %v40_v0 = vld [vmem:[%s1059_s0] sm:$0xff]  ;;  %v42_v1 = vld [vmem:[%s1059_s0 + $0x10] sm:$0xff]  ;;  %v41_v2 = vld [vmem:[%s1059_s0 + $0x8] sm:$0xff] }
   0x2   :  { %v45_v3 = vsel %vm44_vm0, %v40_v0, 0.0  ;;  %v51_v4 = vsel %vm44_vm0, %v42_v1, 0.0  ;;  %v43_v5 = vld [vmem:[%s1059_s0 + $0x18] sm:$0xff]  ;;  %v48_v6 = vsel %vm44_vm0, %v41_v2, 0.0 }
   0x3   :  { %46 = vadd.xlane.f32.xlu0 %v45_v3  ;;  %52 = vadd.xlane.f32.xlu1 %v51_v4  ;;  %v54_v7 = vsel %vm44_vm0, %v43_v5, 0.0 }
   0x7   :  { %49 = vadd.xlane.f32.xlu0 %v48_v6  ;;  %55 = vadd.xlane.f32.xlu1 %v54_v7 }
   0x8   :  { %16 = vsyncpa [#allocation3], 0  ;;  %v808_v28 = vld [vmem:[%s1060_s1] sm:$0xff]   ;;  %v809_v29 = vld [vmem:[%s1060_s1 + $0x8] sm:$0xff]   ;;  %vm186_vm1 = vcmask 261120   ;;  %vm875_vm2 = vmmov 0  }
   0x9   :  { %753 = vmatprep.subr.bf16.mxu0 %v808_v28  ;;  %v810_v30 = vld [vmem:[%s1060_s1 + $0x10] sm:$0xff]   ;;  %v706_v53 = vld [vmem:[%s1061_s2] ss:$0 sm:$0xff]  ;;  %vm490_vm3 = vcmask 130048   ;;  %vm571_vm4 = vcmask 1041409   ;;  %s876_s27 = smov [#allocation2]  }
   0xa   :  { %754 = vmatpush3.bf16.msra.mxu0 %v808_v28 }
   0xb   :  { %755 = vmatprep.subr.bf16.mxu0 %v809_v29 }
   0xe   :  { %756 = vmatpush3.bf16.msra.mxu0 %v809_v29 }
   0xf   :  { %757 = vmatprep.subr.bf16.mxu0 %v810_v30 }
  0x12   :  { %758 = vmatpush3.bf16.msra.mxu0 %v810_v30 }
  0x90   :  { %v47_v8 = vpop.xlane.xlu0 %46  ;;  %v53_v9 = vpop.xlane.xlu1 %52 }
  0x91   :  { %v58_v10 = vmul.f32 0.020833334, %v47_v8  ;;  %v60_v11 = vmul.f32 0.020833334, %v53_v9 }
  0x93   :  { %v62_v12 = vsub.f32 %v40_v0, %v58_v10  ;;  %v64_v13 = vsub.f32 %v42_v1, %v60_v11 }
  0x94   :  { %v50_v14 = vpop.xlane.xlu0 %49  ;;  %v56_v15 = vpop.xlane.xlu1 %55 }
  0x95   :  { %v59_v16 = vmul.f32 0.020833334, %v50_v14  ;;  %v61_v17 = vmul.f32 0.020833334, %v56_v15  ;;  %v66_v18 = vmul.f32 %v62_v12, %v62_v12  ;;  %v68_v19 = vmul.f32 %v64_v13, %v64_v13 }
  0x97   :  { %v63_v20 = vsub.f32 %v41_v2, %v59_v16  ;;  %v65_v21 = vsub.f32 %v43_v5, %v61_v17  ;;  %v70_v22 = vsel %vm44_vm0, %v66_v18, 0.0  ;;  %v76_v23 = vsel %vm44_vm0, %v68_v19, 0.0 }
  0x98   :  { %71 = vadd.xlane.f32.xlu0 %v70_v22  ;;  %v811_v22 = vld [vmem:[%s1062_s3] sm:$0xff]  }
  0x99   :  { %v67_v24 = vmul.f32 %v63_v20, %v63_v20  ;;  %v69_v25 = vmul.f32 %v65_v21, %v65_v21  ;;  %763 = vmatprep.subr.bf16.mxu1 %v811_v22 }
  0x9a   :  { %764 = vmatpush3.bf16.msra.mxu1 %v811_v22 }
  0x9b   :  { %v73_v26 = vsel %vm44_vm0, %v67_v24, 0.0  ;;  %v79_v27 = vsel %vm44_vm0, %v69_v25, 0.0  ;;  %v813_v24 = vld [vmem:[%s1064_s5] sm:$0xff]  }
  0x9c   :  { %77 = vadd.xlane.f32.xlu0 %v76_v23  ;;  %74 = vadd.xlane.f32.xlu1 %v73_v26  ;;  %v812_v23 = vld [vmem:[%s1062_s3 + $0x8] sm:$0xff]  }
  0x9d   :  { %765 = vmatprep.subr.bf16.mxu1 %v812_v23 }
  0x9e   :  { %766 = vmatpush3.bf16.msra.mxu1 %v812_v23 }
  0x9f   :  { %771 = vmatprep.subr.bf16.mxu1 %v813_v24 }
  0xa0   :  { %80 = vadd.xlane.f32.xlu1 %v79_v27 }
 0x125   :  { %v72_v31 = vpop.xlane.xlu0 %71 }
 0x126   :  { %v82_v32 = vmul.f32 0.020833334, %v72_v31 }
 0x128   :  { %v86_v33 = vadd.f32 1e-05, %v82_v32 }
 0x129   :  { %v75_v34 = vpop.xlane.xlu1 %74  ;;  %v78_v35 = vpop.xlane.xlu0 %77 }
 0x12a   :  { %v83_v36 = vmul.f32 0.020833334, %v75_v34  ;;  %v84_v37 = vmul.f32 0.020833334, %v78_v35  ;;  %818 = vrsqrt.f32 %v86_v33 }
 0x12c   :  { %v87_v38 = vadd.f32 1e-05, %v83_v36  ;;  %v88_v39 = vadd.f32 1e-05, %v84_v37 }
 0x12d   :  { %v81_v40 = vpop.xlane.xlu1 %80 }
 0x12e   :  { %820 = vrsqrt.f32 %v87_v38  ;;  %v85_v41 = vmul.f32 0.020833334, %v81_v40 }
 0x12f   :  { %822 = vrsqrt.f32 %v88_v39 }
 0x130   :  { %v89_v42 = vadd.f32 1e-05, %v85_v41 }
 0x132   :  { %824 = vrsqrt.f32 %v89_v42 }
 0x134   :  { %v819_v43 = vpop.eup %818 }
 0x135   :  { %v94_v45 = vmul.f32 %v819_v43, %v62_v12 }
 0x138   :  { %v821_v44 = vpop.eup %820 }
 0x139   :  { %v95_v46 = vmul.f32 %v821_v44, %v63_v20  ;;  %v823_v47 = vpop.eup %822 }
 0x13a   :  { %v96_v50 = vmul.f32 %v823_v47, %v64_v13  ;;  %v814_v47 = vld [vmem:[%s1064_s5 + $0x8] sm:$0xff]  }
 0x13b   :  { %v98_v48 = vpack.c.bf16 %v95_v46, %v94_v45 }
 0x13c   :  { %v825_v49 = vpop.eup %824 }
 0x13d   :  { %759 = vmatprep.mubr.msk.bf16.mxu0 %vm44_vm0, %v98_v48  ;;  %v97_v51 = vmul.f32 %v825_v49, %v65_v21  ;;  %v874_v48 = vmov 0.0  }
 0x13e   :  { %779 = vmatprep.subr.bf16.mxu0 %v874_v48 }
 0x13f   :  { %v99_v52 = vpack.c.bf16 %v97_v51, %v96_v50  ;;  %v712_v50 = vld [vmem:[%s1063_s4] ss:$0 sm:$0xff] }
 0x141   :  { %760 = vmatmul.mubr.msk.bf16.vlgmr.msra.gmra.mrb[0].mxu0 %vm44_vm0, %v99_v52 }
 0x142   :  { %781 = vmatprep.mubr.msk.bf16.mxu0 %vm875_vm2, %v874_v48 }
 0x214   :  { %v761_v54 = vpop.f32.mrb[0].mxu0 }
 0x215   :  { %v171_v55 = vpop.f32.mrb[1].mxu0  ;;  %v180_v59 = vadd.f32 %v761_v54, %v706_v53 }
 0x216   :  { %v172_v56 = vadd.f32 %v706_v53, %v171_v55  ;;  %v762_v57 = vpop.f32.mrb[2].mxu0 }
 0x217   :  { %v174_v58 = vpop.f32.mrb[3].mxu0  ;;  %v183_v62 = vadd.f32 %v762_v57, %v706_v53  ;;  %v193_v0 = vsel %vm186_vm1, %v180_v59, 0.0 }
 0x218   :  { %v175_v60 = vadd.f32 %v706_v53, %v174_v58  ;;  %v187_v61 = vsel %vm186_vm1, %v172_v56, 0.0 }
 0x219   :  { %188 = vadd.xlane.f32.xlu0 %v187_v61  ;;  %v196_v1 = vsel %vm186_vm1, %v183_v62, 0.0  ;;  %v717_v61 = vld [vmem:[%s1065_s6] ss:$0 sm:$0xff] }
 0x21a   :  { %v190_v63 = vsel %vm186_vm1, %v175_v60, 0.0 }
 0x21b   :  { %191 = vadd.xlane.f32.xlu1 %v190_v63 }
 0x21d   :  { %194 = vadd.xlane.f32.xlu0 %v193_v0 }
 0x21f   :  { %197 = vadd.xlane.f32.xlu1 %v196_v1 }
 0x2a6   :  { %v189_v2 = vpop.xlane.xlu0 %188 }
 0x2a7   :  { %v200_v3 = vmul.f32 0.03125, %v189_v2 }
 0x2a8   :  { %v192_v4 = vpop.xlane.xlu1 %191 }
 0x2a9   :  { %v204_v5 = vsub.f32 %v172_v56, %v200_v3  ;;  %v201_v6 = vmul.f32 0.03125, %v192_v4 }
 0x2aa   :  { %v195_v7 = vpop.xlane.xlu0 %194 }
 0x2ab   :  { %v205_v8 = vsub.f32 %v175_v60, %v201_v6  ;;  %v202_v9 = vmul.f32 0.03125, %v195_v7  ;;  %v208_v10 = vmul.f32 %v204_v5, %v204_v5 }
 0x2ac   :  { %v198_v11 = vpop.xlane.xlu1 %197 }
 0x2ad   :  { %v206_v12 = vsub.f32 %v180_v59, %v202_v9  ;;  %v203_v13 = vmul.f32 0.03125, %v198_v11  ;;  %v212_v14 = vsel %vm186_vm1, %v208_v10, 0.0  ;;  %v209_v15 = vmul.f32 %v205_v8, %v205_v8 }
 0x2ae   :  { %213 = vadd.xlane.f32.xlu0 %v212_v14 }
 0x2af   :  { %v207_v16 = vsub.f32 %v183_v62, %v203_v13  ;;  %v215_v17 = vsel %vm186_vm1, %v209_v15, 0.0  ;;  %v210_v18 = vmul.f32 %v206_v12, %v206_v12 }
 0x2b0   :  { %216 = vadd.xlane.f32.xlu1 %v215_v17 }
 0x2b1   :  { %v218_v19 = vsel %vm186_vm1, %v210_v18, 0.0  ;;  %v211_v20 = vmul.f32 %v207_v16, %v207_v16 }
 0x2b2   :  { %219 = vadd.xlane.f32.xlu0 %v218_v19 }
 0x2b3   :  { %v221_v21 = vsel %vm186_vm1, %v211_v20, 0.0 }
 0x2b4   :  { %222 = vadd.xlane.f32.xlu1 %v221_v21 }
 0x33b   :  { %v214_v25 = vpop.xlane.xlu0 %213 }
 0x33c   :  { %v224_v26 = vmul.f32 0.03125, %v214_v25 }
 0x33d   :  { %v217_v27 = vpop.xlane.xlu1 %216 }
 0x33e   :  { %v228_v28 = vadd.f32 1e-05, %v224_v26  ;;  %v225_v29 = vmul.f32 0.03125, %v217_v27 }
 0x33f   :  { %v220_v30 = vpop.xlane.xlu0 %219 }
 0x340   :  { %826 = vrsqrt.f32 %v228_v28  ;;  %v229_v31 = vadd.f32 1e-05, %v225_v29  ;;  %v226_v32 = vmul.f32 0.03125, %v220_v30 }
 0x341   :  { %v223_v33 = vpop.xlane.xlu1 %222 }
 0x342   :  { %828 = vrsqrt.f32 %v229_v31  ;;  %v230_v34 = vadd.f32 1e-05, %v226_v32  ;;  %v227_v35 = vmul.f32 0.03125, %v223_v33 }
 0x344   :  { %830 = vrsqrt.f32 %v230_v34  ;;  %v231_v36 = vadd.f32 1e-05, %v227_v35 }
 0x346   :  { %832 = vrsqrt.f32 %v231_v36 }
 0x34a   :  { %v827_v37 = vpop.eup %826 }
 0x34b   :  { %v236_v39 = vmul.f32 %v827_v37, %v204_v5 }
 0x34c   :  { %v829_v38 = vpop.eup %828 }
 0x34d   :  { %v237_v40 = vmul.f32 %v829_v38, %v205_v8 }
 0x34e   :  { %v831_v41 = vpop.eup %830 }
 0x34f   :  { %v240_v42 = vpack.c.bf16 %v237_v40, %v236_v39  ;;  %v238_v44 = vmul.f32 %v831_v41, %v206_v12  ;;  %v815_v41 = vld [vmem:[%s1066_s7] sm:$0xff]  }
 0x350   :  { %v833_v43 = vpop.eup %832 }
 0x351   :  { %767 = vmatprep.mubr.msk.bf16.mxu1 %vm186_vm1, %v240_v42  ;;  %v239_v45 = vmul.f32 %v833_v43, %v207_v16 }
 0x353   :  { %v241_v46 = vpack.c.bf16 %v239_v45, %v238_v44 }
 0x355   :  { %768 = vmatmul.mubr.msk.bf16.vlgmr.msra.gmra.mrb[0].mxu1 %vm186_vm1, %v241_v46 }
 0x356   :  { %772 = vmatpush3.bf16.msra.mxu1 %v813_v24  ;;  %775 = vmatprep.mubr.msk.bf16.mxu1 %vm186_vm1, %v240_v42 }
 0x357   :  { %773 = vmatprep.subr.bf16.mxu1 %v814_v47 }
 0x35a   :  { %774 = vmatpush3.bf16.msra.mxu1 %v814_v47 }
 0x35b   :  { %785 = vmatprep.subr.bf16.mxu1 %v874_v48 }
 0x35d   :  { %776 = vmatmul.mubr.msk.bf16.vlgmr.msra.gmra.mrb[4].mxu1 %vm186_vm1, %v241_v46 }
 0x35e   :  { %787 = vmatprep.mubr.msk.bf16.mxu1 %vm875_vm2, %v874_v48 }
 0x428   :  { %v769_v49 = vpop.f32.mrb[0].mxu1 }
 0x429   :  { %v305_v51 = vpop.f32.mrb[1].mxu1  ;;  %v314_v53 = vadd.f32 %v769_v49, %v712_v50 }
 0x42a   :  { %v770_v52 = vpop.f32.mrb[2].mxu1  ;;  %v306_v56 = vadd.f32 %v712_v50, %v305_v51 }
 0x42b   :  { %v317_v54 = vadd.f32 %v770_v52, %v712_v50  ;;  %v308_v55 = vpop.f32.mrb[3].mxu1 }
 0x42c   :  { %v309_v57 = vadd.f32 %v712_v50, %v308_v55 }
 0x42d   :  { %v321_v58 = vpack.c.bf16 %v317_v54, %v314_v53 }
 0x42e   :  { %v320_v59 = vpack.c.bf16 %v309_v57, %v306_v56 }
 0x430   :  { %v777_v60 = vpop.f32.mrb[4].mxu1 }
 0x431   :  { %v379_v62 = vpop.f32.mrb[5].mxu1  ;;  %v388_v0 = vadd.f32 %v777_v60, %v717_v61 }
 0x432   :  { %v778_v63 = vpop.f32.mrb[6].mxu1  ;;  %v380_v3 = vadd.f32 %v717_v61, %v379_v62 }
 0x433   :  { %v391_v1 = vadd.f32 %v778_v63, %v717_v61  ;;  %v382_v2 = vpop.f32.mrb[7].mxu1 }
 0x434   :  { %v383_v4 = vadd.f32 %v717_v61, %v382_v2 }
 0x435   :  { %v395_v5 = vpack.c.bf16 %v391_v1, %v388_v0 }
 0x436   :  { %v394_v6 = vpack.c.bf16 %v383_v4, %v380_v3 }
 0x437   :  { %v447_v7 = vsel %vm186_vm1, %v395_v5, 0 }
 0x438   :  { %786 = vmatpush3.bf16.xpose.msra.mxu1 %v447_v7  ;;  %v400_v8 = vsel %vm186_vm1, %v394_v6, 0 }
 0x439   :  { %780 = vmatpush3.bf16.xpose.msra.mxu0 %v400_v8  ;;  %797 = vmatprep.subr.bf16.mxu1 %v874_v48 }
 0x43a   :  { %791 = vmatprep.subr.bf16.mxu0 %v874_v48 }
 0x43f   :  { %788 = vmatmul.mubr.msk.bf16.vlgmr.msra.gmra.mrb[8].mxu1 %vm186_vm1, %v321_v58 }
 0x440   :  { %782 = vmatmul.mubr.msk.bf16.vlgmr.msra.gmra.mrb[4].mxu0 %vm186_vm1, %v320_v59  ;;  %801 = vmatprep.mubr.msk.bf16.mxu1 %vm875_vm2, %v874_v48 }
 0x441   :  { %793 = vmatprep.mubr.msk.bf16.mxu0 %vm875_vm2, %v874_v48  ;;  %792 = vmatpush3.bf16.msra.mxu0 %v815_v41 }
 0x512   :  { %v483_v9 = vpop.f32.mrb[8].mxu1 }
 0x513   :  { %v436_v10 = vpop.f32.mrb[4].mxu0  ;;  %v789_v11 = vpop.f32.mrb[9].mxu1  ;;  %v497_v19 = vsel %vm490_vm3, %v483_v9, -inf }
 0x514   :  { %v783_v12 = vpop.f32.mrb[5].mxu0  ;;  %v486_v13 = vpop.f32.mrb[10].mxu1  ;;  %v491_v14 = vsel %vm490_vm3, %v436_v10, -inf }
 0x515   :  { %v790_v15 = vpop.f32.mrb[11].mxu1  ;;  %492 = vmax.xlane.f32.xlu0 %v491_v14  ;;  %v439_v16 = vpop.f32.mrb[6].mxu0  ;;  %v500_v20 = vsel %vm490_vm3, %v486_v13, -inf }
 0x516   :  { %v784_v17 = vpop.f32.mrb[7].mxu0  ;;  %v494_v18 = vsel %vm490_vm3, %v439_v16, -inf }
 0x517   :  { %495 = vmax.xlane.f32.xlu1 %v494_v18  ;;  %v816_v17 = vld [vmem:[%s1068_s9] sm:$0xff]   ;;  %v817_v18 = vld [vmem:[%s1068_s9 + $0x8] sm:$0xff]   ;;  %s698_s9 = sshll.u32 %s876_s27, 4  ;;  %s699_s9 = int_to_ptr.vmem [resolvable:$true] %s698_s9 }
 0x518   :  { %798 = vmatpush3.bf16.msra.mxu1 %v816_v17  ;;  %p855_p1 = scmp.lt.s32.totalorder %s699_s9, %s699_s9 }
 0x519   :  { %498 = vmax.xlane.f32.xlu0 %v497_v19  ;;  %799 = vmatprep.subr.bf16.mxu1 %v874_v48  ;;  %v724_v19 = vld [vmem:[%s1067_s8] ss:$0 sm:$0xff]  ;;  %s850_s8 = scalar_lea.vmem %s699_s9, 32 }
 0x51a   :  { %v727_v48 = vld [vmem:[%s1069_s10] ss:$0 sm:$0xff]  ;;  %p851_p0 = scmp.ne.s32.totalorder %s699_s9, %s850_s8  ;;  %p856_p2 = scmp.lt.s32.totalorder %s850_s8, %s850_s8 }
 0x51b   :  { %501 = vmax.xlane.f32.xlu1 %v500_v20 }
 0x51c   :  { %800 = vmatpush3.bf16.msra.mxu1 %v817_v18  ;;  %p857_p3 = por %p856_p2, %p855_p1 }
 0x51e   :  { %p858_p4 = pnand %p857_p3, %p851_p0 }
 0x5a2   :  { %v493_v21 = vpop.xlane.xlu0 %492 }
 0x5a3   :  { %v503_v22 = vsub.f32 %v436_v10, %v493_v21 }
 0x5a4   :  { %v496_v23 = vpop.xlane.xlu1 %495 }
 0x5a5   :  { %v507_v24 = vmul.f32 1.442695, %v503_v22  ;;  %v504_v25 = vsub.f32 %v439_v16, %v496_v23 }
 0x5a6   :  { %v499_v26 = vpop.xlane.xlu0 %498 }
 0x5a7   :  { %834 = vpow2.f32 %v507_v24  ;;  %v509_v27 = vmul.f32 1.442695, %v504_v25  ;;  %v505_v28 = vsub.f32 %v483_v9, %v499_v26 }
 0x5a8   :  { %v502_v29 = vpop.xlane.xlu1 %501 }
 0x5a9   :  { %836 = vpow2.f32 %v509_v27  ;;  %v511_v30 = vmul.f32 1.442695, %v505_v28  ;;  %v506_v31 = vsub.f32 %v486_v13, %v502_v29 }
 0x5ab   :  { %838 = vpow2.f32 %v511_v30  ;;  %v513_v32 = vmul.f32 1.442695, %v506_v31 }
 0x5ad   :  { %840 = vpow2.f32 %v513_v32 }
 0x5b1   :  { %v835_v33 = vpop.eup %834 }
 0x5b2   :  { %v515_v34 = vsel %vm490_vm3, %v835_v33, 0.0 }
 0x5b3   :  { %v837_v35 = vpop.eup %836  ;;  %516 = vadd.xlane.f32.xlu0 %v515_v34 }
 0x5b4   :  { %v518_v36 = vsel %vm490_vm3, %v837_v35, 0.0 }
 0x5b5   :  { %v839_v37 = vpop.eup %838  ;;  %519 = vadd.xlane.f32.xlu1 %v518_v36 }
 0x5b6   :  { %v521_v38 = vsel %vm490_vm3, %v839_v37, 0.0 }
 0x5b7   :  { %v841_v39 = vpop.eup %840  ;;  %522 = vadd.xlane.f32.xlu0 %v521_v38 }
 0x5b8   :  { %v524_v40 = vsel %vm490_vm3, %v841_v39, 0.0 }
 0x5b9   :  { %525 = vadd.xlane.f32.xlu1 %v524_v40 }
 0x640   :  { %v517_v42 = vpop.xlane.xlu0 %516 }
 0x641   :  { %842 = vrcp.f32 %v517_v42 }
 0x642   :  { %v520_v43 = vpop.xlane.xlu1 %519 }
 0x643   :  { %844 = vrcp.f32 %v520_v43 }
 0x644   :  { %v523_v44 = vpop.xlane.xlu0 %522 }
 0x645   :  { %846 = vrcp.f32 %v523_v44 }
 0x646   :  { %v526_v45 = vpop.xlane.xlu1 %525 }
 0x647   :  { %848 = vrcp.f32 %v526_v45 }
 0x64b   :  { %v843_v46 = vpop.eup %842 }
 0x64c   :  { %v531_v47 = vmul.f32 %v843_v46, %v835_v33 }
 0x64d   :  { %v845_v49 = vpop.eup %844 }
 0x64e   :  { %v532_v50 = vmul.f32 %v845_v49, %v837_v35  ;;  %v535_v52 = vsel %vm490_vm3, %v531_v47, 0.0 }
 0x64f   :  { %v847_v51 = vpop.eup %846 }
 0x650   :  { %v536_v53 = vsel %vm490_vm3, %v532_v50, 0.0  ;;  %v533_v54 = vmul.f32 %v847_v51, %v839_v37 }
 0x651   :  { %v849_v55 = vpop.eup %848  ;;  %v537_v56 = vadd.f32 %v536_v53, %v535_v52 }
 0x652   :  { %v534_v57 = vmul.f32 %v849_v55, %v841_v39  ;;  %v544_v59 = vsel %vm490_vm3, %v533_v54, 0.0 }
 0x653   :  { %v538_v58 = vrot.slane %v537_v56, 4 }
 0x654   :  { %v545_v60 = vsel %vm490_vm3, %v534_v57, 0.0 }
 0x655   :  { %v539_v61 = vadd.f32 %v538_v58, %v537_v56  ;;  %v546_v62 = vadd.f32 %v545_v60, %v544_v59 }
 0x657   :  { %v540_v63 = vrot.slane %v539_v61, 2  ;;  %v547_v0 = vrot.slane %v546_v62, 4 }
 0x659   :  { %v541_v1 = vadd.f32 %v540_v63, %v539_v61  ;;  %v548_v2 = vadd.f32 %v547_v0, %v546_v62 }
 0x65b   :  { %v549_v3 = vrot.slane %v548_v2, 2  ;;  %v542_v4 = vrot.slane %v541_v1, 1 }
 0x65d   :  { %v550_v5 = vadd.f32 %v549_v3, %v548_v2  ;;  %v543_v6 = vadd.f32 %v542_v4, %v541_v1 }
 0x65f   :  { %v551_v7 = vrot.slane %v550_v5, 1  ;;  %v554_v8 = vmul.f32 0.0625, %v543_v6 }
 0x661   :  { %v552_v9 = vadd.f32 %v551_v7, %v550_v5  ;;  %v556_v11 = vpack.c.bf16 %v554_v8, %v554_v8 }
 0x663   :  { %v555_v10 = vmul.f32 0.0625, %v552_v9  ;;  %v569_v13 = vunpack.c.l.b16 %v556_v11 }
 0x665   :  { %v557_v12 = vpack.c.bf16 %v555_v10, %v555_v10 }
 0x667   :  { %v570_v14 = vunpack.c.l.b16 %v557_v12 }
 0x669   :  { %v572_v15 = vsel %vm571_vm4, %v570_v14, %v569_v13 }
 0x66a   :  { %v573_v16 = vpack.c.b16 %v572_v15, %v572_v15 }
 0x66c   :  { %794 = vmatmul.mubr.msk.bf16.vlgmr.msra.gmra.mrb[8].mxu0 %vm490_vm3, %v573_v16 }
 0x73f   :  { %v617_v20 = vpop.f32.mrb[8].mxu0 }
 0x740   :  { %v618_v21 = vadd.f32 %v724_v19, %v617_v20  ;;  %v795_v22 = vpop.f32.mrb[9].mxu0 }
 0x741   :  { %v620_v23 = vpop.f32.mrb[10].mxu0 }
 0x742   :  { %v623_v24 = vmax.f32 %v618_v21, 0.0  ;;  %v796_v25 = vpop.f32.mrb[11].mxu0 }
 0x744   :  { %v624_v26 = vpack.c.bf16 %v623_v24, %v623_v24 }
 0x746   :  { %802 = vmatmul.mubr.msk.bf16.vlgmr.msra.gmra.mrb[12].mxu1 %vm186_vm1, %v624_v26 }
 0x819   :  { %v685_v27 = vpop.f32.mrb[12].mxu1 }
 0x81a   :  { %v686_v28 = vadd.f32 %v727_v48, %v685_v27  ;;  %v803_v29 = vpop.f32.mrb[13].mxu1 }
 0x81b   :  { %v688_v30 = vpop.f32.mrb[14].mxu1 }
 0x81c   :  { %691 = vst [vmem:[#allocation2] sm:$0x3] %v686_v28  ;;  %v804_v31 = vpop.f32.mrb[15].mxu1 }
 0x81d   :  { %861 = shalt.err (!%p858_p4)
}
 0x81e   :  { %s862_s10 = scalar_lea.hbm %s1070_s11, 32 }
 0x81f   :  { %p863_p5 = scmp.ne.s32.totalorder %s1070_s11, %s862_s10  ;;  %p866_p6 = scmp.lt.u32.totalorder %s862_s10, %s1070_s11 }
 0x821   :  { %p868_p7 = pnand %p866_p6, %p863_p5 }
 0x823   :  { %871 = shalt.err (!%p868_p7)
}
 0x824   :  { %701 = dma.vmem_to_hbm [thread:$0]  %s699_s9, 32, %s1070_s11, [#allocation3]  }
 0x825   :  { %872 = dma.done.wait [#allocation3], 32  }
 0x826   :  { %873 = vsyncadd [#allocation3], 4294967264 }
 0x827   :  { %705 = vsyncpa [#allocation3], 1 }

</bundles_post_ra>
